<compile_context>
chip_gen: v7x
topology: tpu7x:2x2x1
jax: 0.10.0
libtpu: 0.0.40
codegen_flags: <defaults>
</compile_context>

<pallas_src>
import functools

import jax
import jax.numpy as jnp
from jax.experimental import pallas as pl
from jax.experimental.pallas import tpu as pltpu

LANE = 128  # lane width of a TPU vreg


def _round_up(n: int, m: int) -> int:
    return ((n + m - 1) // m) * m


def _mlp_kernel(*refs, num_hidden_layers: int):
    """Fused MLP: [Linear + LeakyReLU(0.2)] * num_hidden_layers, then Linear.

    refs = (x_ref, w0, b0, w1, b1, ..., wL, bL, o_ref); all lane-padded f32.
    """
    x_ref = refs[0]
    o_ref = refs[-1]
    wb = refs[1:-1]

    h = x_ref[...]
    for layer in range(num_hidden_layers):
        w_ref = wb[2 * layer]
        b_ref = wb[2 * layer + 1]
        h = jnp.dot(h, w_ref[...], preferred_element_type=jnp.float32)
        h = h + b_ref[...]                       # (TB, F) + (1, F) broadcast
        h = jnp.where(h >= 0.0, h, 0.2 * h)      # LeakyReLU(0.2)

    # Final Linear(hidden, 1): out dim padded to 128 lanes so the store is a
    # full, unmasked vst; only lane 0 carries the real logit.
    w_ref = wb[-2]
    b_ref = wb[-1]
    y = jnp.dot(h, w_ref[...], preferred_element_type=jnp.float32) + b_ref[...]
    o_ref[...] = y.astype(o_ref.dtype)


def init_discriminator_params(key, input_dim, cond_dim, num_layers, hidden_dim):
    """PyTorch nn.Linear default init (U(-1/sqrt(fan_in), 1/sqrt(fan_in))).

    Weights are stored as [in, out] (transposed vs. PyTorch's [out, in])."""
    dims = []
    in_f = input_dim + cond_dim
    for _ in range(num_layers):
        dims.append((in_f, hidden_dim))
        in_f = hidden_dim
    dims.append((in_f, 1))  # final Linear(hidden_dim, 1)

    params = []
    for (fan_in, fan_out) in dims:
        key, kw, kb = jax.random.split(key, 3)
        bound = 1.0 / jnp.sqrt(jnp.float32(fan_in))
        w = jax.random.uniform(kw, (fan_in, fan_out), jnp.float32, -bound, bound)
        b = jax.random.uniform(kb, (1, fan_out), jnp.float32, -bound, bound)
        params.append((w, b))
    return params


def pack_params(params):
    """Zero-pad every weight/bias to lane-aligned shapes ONCE (do this outside
    the training loop so per-step calls reuse the packed arrays)."""
    packed = []
    for (w, b) in params:
        fin, fout = w.shape
        fin_p, fout_p = _round_up(fin, LANE), _round_up(fout, LANE)
        w_p = jnp.zeros((fin_p, fout_p), jnp.float32).at[:fin, :fout].set(w)
        b_p = jnp.zeros((1, fout_p), jnp.float32).at[:, :fout].set(
            b.reshape(1, -1))
        packed.append((w_p, b_p))
    return packed


def discriminator_forward_packed(x, packed_params, *, batch_tile=128):
    """Forward pass with pre-packed (lane-padded) params; one pallas_call."""
    B, fin = x.shape
    fin_p = packed_params[0][0].shape[0]
    fout_p = packed_params[-1][0].shape[1]

    # Batch tile: up to 128 rows per grid step, sublane-aligned (multiple of 8).
    tb = min(batch_tile, _round_up(B, 8))
    b_pad = _round_up(B, tb)

    x_p = jnp.zeros((b_pad, fin_p), jnp.float32).at[:B, :fin].set(
        x.astype(jnp.float32))

    flat_params = []
    in_specs = [pl.BlockSpec((tb, fin_p), lambda i: (i, 0))]
    for (w, b) in packed_params:
        flat_params += [w, b]
        in_specs.append(pl.BlockSpec(w.shape, lambda i: (0, 0)))  # VMEM-resident
        in_specs.append(pl.BlockSpec(b.shape, lambda i: (0, 0)))

    kernel = functools.partial(
        _mlp_kernel, num_hidden_layers=len(packed_params) - 1)

    flops = 2 * b_pad * sum(w.shape[0] * w.shape[1] for w, _ in packed_params)
    bytes_accessed = 4 * (x_p.size
                          + sum(w.size + b.size for w, b in packed_params)
                          + b_pad * fout_p)

    out = pl.pallas_call(
        kernel,
        out_shape=jax.ShapeDtypeStruct((b_pad, fout_p), jnp.float32),
        grid=(b_pad // tb,),
        in_specs=in_specs,
        out_specs=pl.BlockSpec((tb, fout_p), lambda i: (i, 0)),
        compiler_params=pltpu.CompilerParams(
            dimension_semantics=("parallel",)),
        cost_estimate=pl.CostEstimate(
            flops=flops, transcendentals=0, bytes_accessed=bytes_accessed),
    )(x_p, *flat_params)

    return out[:B, :1]  # real logit lives in lane 0


def discriminator_forward(x, params):
    """Convenience wrapper: packs params then runs the fused kernel."""
    return discriminator_forward_packed(x, pack_params(params))


def _reference_forward(x, params):
    """Pure-JAX reference for correctness check (unpadded params)."""
    h = x
    for (w, b) in params[:-1]:
        h = jnp.dot(h, w) + b
        h = jnp.where(h >= 0.0, h, 0.2 * h)
    w_out, b_out = params[-1]
    return jnp.dot(h, w_out) + b_out


if __name__ == "__main__":
    # Discriminator(input_dim=12, cond_dim=4, num_layers=3, hidden_dim=32);
    # x is the already-concatenated [data, cond] of shape (batch, 16).
    input_dim, cond_dim, num_layers, hidden_dim = 12, 4, 3, 32
    batch = 8

    key = jax.random.PRNGKey(0)
    key, kx = jax.random.split(key)
    x = jax.random.normal(kx, (batch, input_dim + cond_dim), dtype=jnp.float32)

    params = init_discriminator_params(key, input_dim, cond_dim,
                                       num_layers, hidden_dim)
    packed = pack_params(params)  # pad once, reuse every step

    out = discriminator_forward_packed(x, packed)
    out = jax.block_until_ready(out)

    ref = _reference_forward(x, params)
    assert out.shape == (batch, 1), out.shape
    assert jnp.allclose(out, ref, atol=1e-5, rtol=1e-5), "mismatch vs reference"

    print("KERNEL_OK")
</pallas_src>

<mosaic_0001>
module attributes {stable_mosaic.version = 11 : i64} {
  func.func @_mlp_kernel(%arg0: i32, %arg1: memref<8x128xf32, #tpu.memory_space<vmem>>, %arg2: memref<128x128xf32, #tpu.memory_space<vmem>>, %arg3: memref<1x128xf32, #tpu.memory_space<vmem>>, %arg4: memref<128x128xf32, #tpu.memory_space<vmem>>, %arg5: memref<1x128xf32, #tpu.memory_space<vmem>>, %arg6: memref<128x128xf32, #tpu.memory_space<vmem>>, %arg7: memref<1x128xf32, #tpu.memory_space<vmem>>, %arg8: memref<128x128xf32, #tpu.memory_space<vmem>>, %arg9: memref<1x128xf32, #tpu.memory_space<vmem>>, %arg10: memref<8x128xf32, #tpu.memory_space<vmem>>) attributes {dimension_semantics = [#tpu.dimension_semantics<parallel>], iteration_bounds = array<i64: 1>, scalar_prefetch = 0 : i64, scratch_operands = 0 : i64, tpu.core_type = #tpu.core_type<tc>, window_params = [{transform_indices = @transform_0, window_bounds = array<i64: 8, 128>}, {pipeline_mode = #tpu.pipeline_mode<synchronous>, transform_indices = @transform_1, window_bounds = array<i64: 128, 128>}, {pipeline_mode = #tpu.pipeline_mode<synchronous>, transform_indices = @transform_2, window_bounds = array<i64: 1, 128>}, {pipeline_mode = #tpu.pipeline_mode<synchronous>, transform_indices = @transform_3, window_bounds = array<i64: 128, 128>}, {pipeline_mode = #tpu.pipeline_mode<synchronous>, transform_indices = @transform_4, window_bounds = array<i64: 1, 128>}, {pipeline_mode = #tpu.pipeline_mode<synchronous>, transform_indices = @transform_5, window_bounds = array<i64: 128, 128>}, {pipeline_mode = #tpu.pipeline_mode<synchronous>, transform_indices = @transform_6, window_bounds = array<i64: 1, 128>}, {pipeline_mode = #tpu.pipeline_mode<synchronous>, transform_indices = @transform_7, window_bounds = array<i64: 128, 128>}, {pipeline_mode = #tpu.pipeline_mode<synchronous>, transform_indices = @transform_8, window_bounds = array<i64: 1, 128>}, {transform_indices = @transform_9, window_bounds = array<i64: 8, 128>}]} {
    %c0 = arith.constant 0 : index
    %c0_0 = arith.constant 0 : index
    %0 = vector.load %arg1[%c0, %c0_0] : memref<8x128xf32, #tpu.memory_space<vmem>>, vector<8x128xf32>
    %c0_1 = arith.constant 0 : index
    %c0_2 = arith.constant 0 : index
    %1 = vector.load %arg2[%c0_1, %c0_2] : memref<128x128xf32, #tpu.memory_space<vmem>>, vector<128x128xf32>
    %cst = arith.constant dense<0.000000e+00> : vector<8x128xf32>
    %2 = tpu.matmul %0, %1, %cst {dimension_numbers = #tpu.dot_dimension_numbers<[1], [0], [0], [1], [0, 0, 1, 1], [], []>} : vector<8x128xf32>, vector<128x128xf32>, vector<8x128xf32> -> vector<8x128xf32>
    %c0_3 = arith.constant 0 : index
    %c0_4 = arith.constant 0 : index
    %3 = vector.load %arg3[%c0_3, %c0_4] : memref<1x128xf32, #tpu.memory_space<vmem>>, vector<1x128xf32>
    %4 = vector.broadcast %3 : vector<1x128xf32> to vector<8x128xf32>
    %5 = arith.addf %2, %4 : vector<8x128xf32>
    %cst_5 = arith.constant 0.000000e+00 : f32
    %6 = vector.broadcast %cst_5 : f32 to vector<8x128xf32>
    %7 = arith.cmpf oge, %5, %6 : vector<8x128xf32>
    %cst_6 = arith.constant 2.000000e-01 : f32
    %8 = vector.broadcast %cst_6 : f32 to vector<8x128xf32>
    %9 = arith.mulf %8, %5 : vector<8x128xf32>
    %10 = arith.select %7, %5, %9 : vector<8x128xi1>, vector<8x128xf32>
    %c0_7 = arith.constant 0 : index
    %c0_8 = arith.constant 0 : index
    %11 = vector.load %arg4[%c0_7, %c0_8] : memref<128x128xf32, #tpu.memory_space<vmem>>, vector<128x128xf32>
    %cst_9 = arith.constant dense<0.000000e+00> : vector<8x128xf32>
    %12 = tpu.matmul %10, %11, %cst_9 {dimension_numbers = #tpu.dot_dimension_numbers<[1], [0], [0], [1], [0, 0, 1, 1], [], []>} : vector<8x128xf32>, vector<128x128xf32>, vector<8x128xf32> -> vector<8x128xf32>
    %c0_10 = arith.constant 0 : index
    %c0_11 = arith.constant 0 : index
    %13 = vector.load %arg5[%c0_10, %c0_11] : memref<1x128xf32, #tpu.memory_space<vmem>>, vector<1x128xf32>
    %14 = vector.broadcast %13 : vector<1x128xf32> to vector<8x128xf32>
    %15 = arith.addf %12, %14 : vector<8x128xf32>
    %cst_12 = arith.constant 0.000000e+00 : f32
    %16 = vector.broadcast %cst_12 : f32 to vector<8x128xf32>
    %17 = arith.cmpf oge, %15, %16 : vector<8x128xf32>
    %cst_13 = arith.constant 2.000000e-01 : f32
    %18 = vector.broadcast %cst_13 : f32 to vector<8x128xf32>
    %19 = arith.mulf %18, %15 : vector<8x128xf32>
    %20 = arith.select %17, %15, %19 : vector<8x128xi1>, vector<8x128xf32>
    %c0_14 = arith.constant 0 : index
    %c0_15 = arith.constant 0 : index
    %21 = vector.load %arg6[%c0_14, %c0_15] : memref<128x128xf32, #tpu.memory_space<vmem>>, vector<128x128xf32>
    %cst_16 = arith.constant dense<0.000000e+00> : vector<8x128xf32>
    %22 = tpu.matmul %20, %21, %cst_16 {dimension_numbers = #tpu.dot_dimension_numbers<[1], [0], [0], [1], [0, 0, 1, 1], [], []>} : vector<8x128xf32>, vector<128x128xf32>, vector<8x128xf32> -> vector<8x128xf32>
    %c0_17 = arith.constant 0 : index
    %c0_18 = arith.constant 0 : index
    %23 = vector.load %arg7[%c0_17, %c0_18] : memref<1x128xf32, #tpu.memory_space<vmem>>, vector<1x128xf32>
    %24 = vector.broadcast %23 : vector<1x128xf32> to vector<8x128xf32>
    %25 = arith.addf %22, %24 : vector<8x128xf32>
    %cst_19 = arith.constant 0.000000e+00 : f32
    %26 = vector.broadcast %cst_19 : f32 to vector<8x128xf32>
    %27 = arith.cmpf oge, %25, %26 : vector<8x128xf32>
    %cst_20 = arith.constant 2.000000e-01 : f32
    %28 = vector.broadcast %cst_20 : f32 to vector<8x128xf32>
    %29 = arith.mulf %28, %25 : vector<8x128xf32>
    %30 = arith.select %27, %25, %29 : vector<8x128xi1>, vector<8x128xf32>
    %c0_21 = arith.constant 0 : index
    %c0_22 = arith.constant 0 : index
    %31 = vector.load %arg8[%c0_21, %c0_22] : memref<128x128xf32, #tpu.memory_space<vmem>>, vector<128x128xf32>
    %cst_23 = arith.constant dense<0.000000e+00> : vector<8x128xf32>
    %32 = tpu.matmul %30, %31, %cst_23 {dimension_numbers = #tpu.dot_dimension_numbers<[1], [0], [0], [1], [0, 0, 1, 1], [], []>} : vector<8x128xf32>, vector<128x128xf32>, vector<8x128xf32> -> vector<8x128xf32>
    %c0_24 = arith.constant 0 : index
    %c0_25 = arith.constant 0 : index
    %33 = vector.load %arg9[%c0_24, %c0_25] : memref<1x128xf32, #tpu.memory_space<vmem>>, vector<1x128xf32>
    %34 = vector.broadcast %33 : vector<1x128xf32> to vector<8x128xf32>
    %35 = arith.addf %32, %34 : vector<8x128xf32>
    %c0_26 = arith.constant 0 : index
    %c0_27 = arith.constant 0 : index
    %36 = vector.load %arg10[%c0_26, %c0_27] : memref<8x128xf32, #tpu.memory_space<vmem>>, vector<8x128xf32>
    tpu.vector_store %arg10[%c0_26, %c0_27], %35 {strides = array<i32>} : memref<8x128xf32, #tpu.memory_space<vmem>>, vector<8x128xf32>,
    return
  }
  func.func @transform_0(%arg0: i32) -> (i32, i32) {
    %c0_i32 = arith.constant 0 : i32
    %c0_i32_0 = arith.constant 0 : i32
    return %arg0, %c0_i32 : i32, i32
  }
  func.func @transform_1(%arg0: i32) -> (i32, i32) {
    %c0_i32 = arith.constant 0 : i32
    %c0_i32_0 = arith.constant 0 : i32
    %c0_i32_1 = arith.constant 0 : i32
    return %c0_i32, %c0_i32_0 : i32, i32
  }
  func.func @transform_2(%arg0: i32) -> (i32, i32) {
    %c0_i32 = arith.constant 0 : i32
    %c0_i32_0 = arith.constant 0 : i32
    %c0_i32_1 = arith.constant 0 : i32
    return %c0_i32, %c0_i32_0 : i32, i32
  }
  func.func @transform_3(%arg0: i32) -> (i32, i32) {
    %c0_i32 = arith.constant 0 : i32
    %c0_i32_0 = arith.constant 0 : i32
    %c0_i32_1 = arith.constant 0 : i32
    return %c0_i32, %c0_i32_0 : i32, i32
  }
  func.func @transform_4(%arg0: i32) -> (i32, i32) {
    %c0_i32 = arith.constant 0 : i32
    %c0_i32_0 = arith.constant 0 : i32
    %c0_i32_1 = arith.constant 0 : i32
    return %c0_i32, %c0_i32_0 : i32, i32
  }
  func.func @transform_5(%arg0: i32) -> (i32, i32) {
    %c0_i32 = arith.constant 0 : i32
    %c0_i32_0 = arith.constant 0 : i32
    %c0_i32_1 = arith.constant 0 : i32
    return %c0_i32, %c0_i32_0 : i32, i32
  }
  func.func @transform_6(%arg0: i32) -> (i32, i32) {
    %c0_i32 = arith.constant 0 : i32
    %c0_i32_0 = arith.constant 0 : i32
    %c0_i32_1 = arith.constant 0 : i32
    return %c0_i32, %c0_i32_0 : i32, i32
  }
  func.func @transform_7(%arg0: i32) -> (i32, i32) {
    %c0_i32 = arith.constant 0 : i32
    %c0_i32_0 = arith.constant 0 : i32
    %c0_i32_1 = arith.constant 0 : i32
    return %c0_i32, %c0_i32_0 : i32, i32
  }
  func.func @transform_8(%arg0: i32) -> (i32, i32) {
    %c0_i32 = arith.constant 0 : i32
    %c0_i32_0 = arith.constant 0 : i32
    %c0_i32_1 = arith.constant 0 : i32
    return %c0_i32, %c0_i32_0 : i32, i32
  }
  func.func @transform_9(%arg0: i32) -> (i32, i32) {
    %c0_i32 = arith.constant 0 : i32
    %c0_i32_0 = arith.constant 0 : i32
    return %arg0, %c0_i32 : i32, i32
  }
}

</mosaic_0001>

<bundles_post_ra>
// kernel: tpu_custom_call.1
= control target key start
LH: loop header
LB: loop body
LE: loop exit
PB: predicated region body
PF: predicated region fallthrough
CT: control target
= control target key end

     0   :  { %14 = vsyncpa [#allocation3], 0  ;;  %s1155_s0 = inlined_call_operand.hbm [shape: f32[8,128], index: 0, kind: input, shape index: {}]   ;;  %s1156_s1 = inlined_call_operand.hbm [shape: f32[128,128], index: 1, kind: input, shape index: {}]   ;;  %s1157_s2 = inlined_call_operand.vmem [shape: f32[1,128], index: 2, kind: input, shape index: {}]   ;;  %s1158_s3 = inlined_call_operand.hbm [shape: f32[128,128], index: 3, kind: input, shape index: {}]   ;;  %s1159_s4 = inlined_call_operand.vmem [shape: f32[1,128], index: 4, kind: input, shape index: {}]   ;;  %s1160_s5 = inlined_call_operand.hbm [shape: f32[128,128], index: 5, kind: input, shape index: {}]   ;;  %s1161_s6 = inlined_call_operand.vmem [shape: f32[1,128], index: 6, kind: input, shape index: {}]   ;;  %s1162_s7 = inlined_call_operand.hbm [shape: f32[128,128], index: 7, kind: input, shape index: {}]   ;;  %s1163_s8 = inlined_call_operand.vmem [shape: f32[1,128], index: 8, kind: input, shape index: {}]   ;;  %s1164_s9 = inlined_call_operand.hbm [shape: f32[8,128], index: 9, kind: output, shape index: {}]  }
   0x1   :  { %15 = vsyncpa [#allocation6], 0 }
   0x2   :  { %16 = vsyncpa [#allocation9], 0 }
   0x3   :  { %17 = vsyncpa [#allocation4], 0  ;;  %s958_s30 = smov [#allocation5]   ;;  %s818_s13 = scalar_lea.hbm %s1156_s1, 2048 }
   0x4   :  { %s33_s10 = sshll.u32 %s958_s30, 4  ;;  %p819_p0 = scmp.ne.s32.totalorder %s1156_s1, %s818_s13  ;;  %s34_s10 = int_to_ptr.vmem [resolvable:$true] %s33_s10 }
   0x5   :  { %p822_p1 = scmp.lt.u32.totalorder %s818_s13, %s1156_s1 }
   0x7   :  { %p824_p2 = pnand %p822_p1, %p819_p0 }
   0x9   :  { %827 = shalt.err (!%p824_p2)
}
   0xa   :  { %s828_s18 = scalar_lea.vmem %s34_s10, 2048  ;;  %p833_p4 = scmp.lt.s32.totalorder %s34_s10, %s34_s10 }
   0xb   :  { %p829_p3 = scmp.ne.s32.totalorder %s34_s10, %s828_s18  ;;  %p834_p5 = scmp.lt.s32.totalorder %s828_s18, %s828_s18 }
   0xd   :  { %p835_p6 = por %p834_p5, %p833_p4 }
   0xf   :  { %p836_p7 = pnand %p835_p6, %p829_p3 }
  0x11   :  { %839 = shalt.err (!%p836_p7)
}
  0x12   :  { %s959_s19 = smov 128   ;;  %s960_s20 = smov 8  }
  0x13   :  { %39 = dma.hbm_to_vmem [thread:$0]  %s1156_s1, 2048, %s34_s10, [#allocation6], %s959_s19, %s959_s19, %s960_s20  }
  0x14   :  { %s961_s23 = smov [#allocation8]   ;;  %s962_s25 = smov [#allocation2]  }
  0x15   :  { %s61_s24 = sshll.u32 %s961_s23, 4  ;;  %s24_s26 = sshll.u32 %s962_s25, 4  ;;  %s62_s24 = int_to_ptr.vmem [resolvable:$true] %s61_s24  ;;  %s25_s26 = int_to_ptr.vmem [resolvable:$true] %s24_s26 }
  0x16   :  { %s840_s29 = scalar_lea.hbm %s1160_s5, 2048 }
  0x17   :  { %p841_p8 = scmp.ne.s32.totalorder %s1160_s5, %s840_s29  ;;  %p844_p9 = scmp.lt.u32.totalorder %s840_s29, %s1160_s5 }
  0x19   :  { %p846_p10 = pnand %p844_p9, %p841_p8 }
  0x1b   :  { %849 = shalt.err (!%p846_p10)
}
  0x1c   :  { %s850_s1 = scalar_lea.vmem %s62_s24, 2048  ;;  %p855_p12 = scmp.lt.s32.totalorder %s62_s24, %s62_s24 }
  0x1d   :  { %p851_p11 = scmp.ne.s32.totalorder %s62_s24, %s850_s1  ;;  %p856_p13 = scmp.lt.s32.totalorder %s850_s1, %s850_s1 }
  0x1f   :  { %p857_p0 = por %p856_p13, %p855_p12 }
  0x21   :  { %p858_p1 = pnand %p857_p0, %p851_p11 }
  0x23   :  { %861 = shalt.err (!%p858_p1)
}
  0x24   :  { %67 = dma.hbm_to_vmem [thread:$0]  %s1160_s5, 2048, %s62_s24, [#allocation9], %s959_s19, %s959_s19, %s960_s20  }
  0x25   :  { %s862_s17 = scalar_lea.hbm %s1155_s0, 128 }
  0x26   :  { %p863_p2 = scmp.ne.s32.totalorder %s1155_s0, %s862_s17  ;;  %p866_p3 = scmp.lt.u32.totalorder %s862_s17, %s1155_s0 }
  0x28   :  { %p868_p4 = pnand %p866_p3, %p863_p2 }
  0x2a   :  { %871 = shalt.err (!%p868_p4)
}
  0x2b   :  { %s872_s25 = scalar_lea.vmem %s25_s26, 128  ;;  %p877_p6 = scmp.lt.s32.totalorder %s25_s26, %s25_s26 }
  0x2c   :  { %p873_p5 = scmp.ne.s32.totalorder %s25_s26, %s872_s25  ;;  %p878_p7 = scmp.lt.s32.totalorder %s872_s25, %s872_s25 }
  0x2e   :  { %p879_p8 = por %p878_p7, %p877_p6 }
  0x30   :  { %p880_p9 = pnand %p879_p8, %p873_p5 }
  0x32   :  { %883 = shalt.err (!%p880_p9)
}
  0x33   :  { %27 = dma.hbm_to_vmem [thread:$0]  %s1155_s0, 128, %s25_s26, [#allocation3]  }
  0x34   :  { %s963_s27 = smov [#allocation7]   ;;  %s964_s29 = smov [#allocation10]  }
  0x35   :  { %s47_s28 = sshll.u32 %s963_s27, 4  ;;  %s75_s30 = sshll.u32 %s964_s29, 4  ;;  %s48_s28 = int_to_ptr.vmem [resolvable:$true] %s47_s28  ;;  %s76_s30 = int_to_ptr.vmem [resolvable:$true] %s75_s30 }
  0x36   :  { %s884_s13 = scalar_lea.hbm %s1158_s3, 2048 }
  0x37   :  { %p885_p10 = scmp.ne.s32.totalorder %s1158_s3, %s884_s13  ;;  %p888_p11 = scmp.lt.u32.totalorder %s884_s13, %s1158_s3 }
  0x39   :  { %p890_p12 = pnand %p888_p11, %p885_p10 }
  0x3b   :  { %893 = shalt.err (!%p890_p12)
}
  0x3c   :  { %s894_s0 = scalar_lea.vmem %s48_s28, 2048  ;;  %p899_p0 = scmp.lt.s32.totalorder %s48_s28, %s48_s28 }
  0x3d   :  { %p895_p13 = scmp.ne.s32.totalorder %s48_s28, %s894_s0  ;;  %p900_p1 = scmp.lt.s32.totalorder %s894_s0, %s894_s0 }
  0x3f   :  { %p901_p2 = por %p900_p1, %p899_p0 }
  0x41   :  { %p902_p3 = pnand %p901_p2, %p895_p13 }
  0x43   :  { %905 = shalt.err (!%p902_p3)
}
  0x44   :  { %53 = dma.hbm_to_vmem [thread:$0]  %s1158_s3, 2048, %s48_s28, [#allocation6], %s959_s19, %s959_s19, %s960_s20  }
  0x45   :  { %s906_s21 = scalar_lea.hbm %s1162_s7, 2048 }
  0x46   :  { %p907_p4 = scmp.ne.s32.totalorder %s1162_s7, %s906_s21  ;;  %p910_p5 = scmp.lt.u32.totalorder %s906_s21, %s1162_s7 }
  0x48   :  { %p912_p6 = pnand %p910_p5, %p907_p4 }
  0x4a   :  { %915 = shalt.err (!%p912_p6)
}
  0x4b   :  { %s916_s24 = scalar_lea.vmem %s76_s30, 2048  ;;  %p921_p8 = scmp.lt.s32.totalorder %s76_s30, %s76_s30 }
  0x4c   :  { %p917_p7 = scmp.ne.s32.totalorder %s76_s30, %s916_s24  ;;  %p922_p9 = scmp.lt.s32.totalorder %s916_s24, %s916_s24 }
  0x4e   :  { %p923_p10 = por %p922_p9, %p921_p8 }
  0x50   :  { %p924_p11 = pnand %p923_p10, %p917_p7 }
  0x52   :  { %927 = shalt.err (!%p924_p11)
}
  0x53   :  { %81 = dma.hbm_to_vmem [thread:$0]  %s1162_s7, 2048, %s76_s30, [#allocation9], %s959_s19, %s959_s19, %s960_s20  }
  0x54   :  { %950 = dma.done.wait [#allocation3], 128  }
  0x55   :  { %951 = vsyncadd [#allocation3], 4294967168 }
  0x56   :  { %952 = dma.done.wait [#allocation6], 4096  }
  0x57   :  { %953 = vsyncadd [#allocation6], 4294963200 }
  0x58   :  { %954 = dma.done.wait [#allocation9], 4096  }
  0x59   :  { %955 = vsyncadd [#allocation9], 4294963200  ;;  %v965_v0 = vmov 0.0|0.0   ;;  %vm966_vm0 = vmmov 0   ;;  %v967_v1 = vmov 0.0   ;;  %v100_v2 = vld [vmem:[#allocation5] sm:$0xff] }
  0x5a   :  { %711 = vmatprep.subr.bf16.mxu0 %v965_v0  ;;  %603 = vmatprep.mubr.msk.f32.mxu0 %vm966_vm0, %v967_v1  ;;  %v101_v3 = vld [vmem:[#allocation5 + $0x8] sm:$0xff]  ;;  %v102_v4 = vld [vmem:[#allocation5 + $0x10] sm:$0xff]  ;;  %v103_v6 = vld [vmem:[#allocation5 + $0x18] sm:$0xff]  ;;  %s968_s11 = smov [#allocation11]  }
  0x5b   :  { %735 = vmatprep.subr.bf16.mxu1 %v965_v0  ;;  %638 = vmatprep.mubr.msk.f32.mxu1 %vm966_vm0, %v967_v1  ;;  %v712_v5 = vpack.c.bf16 %v101_v3, %v100_v2  ;;  %v715_v7 = vpack.c.bf16 %v103_v6, %v102_v4  ;;  %v104_v8 = vld [vmem:[#allocation5 + $0x20] sm:$0xff]  ;;  %v105_v9 = vld [vmem:[#allocation5 + $0x28] sm:$0xff]  ;;  %v198_v12 = vld [vmem:[#allocation7 + $0x10] sm:$0xff]  ;;  %s488_s12 = sshll.u32 %s968_s11, 4  ;;  %s489_s12 = int_to_ptr.vmem [resolvable:$true] %s488_s12 }
  0x5c   :  { %v196_v10 = vld [vmem:[#allocation7] sm:$0xff]  ;;  %v197_v11 = vld [vmem:[#allocation7 + $0x8] sm:$0xff]  ;;  %v199_v13 = vld [vmem:[#allocation7 + $0x18] sm:$0xff]  ;;  %v718_v14 = vpack.c.bf16 %v105_v9, %v104_v8  ;;  %s928_s13 = scalar_lea.vmem %s489_s12, 128  ;;  %p933_p13 = scmp.lt.s32.totalorder %s489_s12, %s489_s12 }
  0x5d   :  { %713 = vmatpush3.bf16.msra.mxu0 %v712_v5  ;;  %v736_v15 = vpack.c.bf16 %v197_v11, %v196_v10  ;;  %v106_v16 = vld [vmem:[#allocation5 + $0x30] sm:$0xff]  ;;  %v107_v17 = vld [vmem:[#allocation5 + $0x38] sm:$0xff]  ;;  %v739_v18 = vpack.c.bf16 %v199_v13, %v198_v12  ;;  %v200_v19 = vld [vmem:[#allocation7 + $0x20] sm:$0xff]  ;;  %p929_p12 = scmp.ne.s32.totalorder %s489_s12, %s928_s13  ;;  %p934_p0 = scmp.lt.s32.totalorder %s928_s13, %s928_s13 }
  0x5e   :  { %714 = vmatprep.subr.bf16.mxu0 %v965_v0  ;;  %v201_v20 = vld [vmem:[#allocation7 + $0x28] sm:$0xff]  ;;  %v721_v21 = vpack.c.bf16 %v107_v17, %v106_v16  ;;  %v108_v22 = vld [vmem:[#allocation5 + $0x40] sm:$0xff]  ;;  %v202_v25 = vld [vmem:[#allocation7 + $0x30] sm:$0xff] }
  0x5f   :  { %737 = vmatpush3.bf16.msra.mxu1 %v736_v15  ;;  %v109_v23 = vld [vmem:[#allocation5 + $0x48] sm:$0xff]  ;;  %v742_v24 = vpack.c.bf16 %v201_v20, %v200_v19  ;;  %v203_v26 = vld [vmem:[#allocation7 + $0x38] sm:$0xff]  ;;  %v110_v28 = vld [vmem:[#allocation5 + $0x50] sm:$0xff]  ;;  %p935_p1 = por %p934_p0, %p933_p13 }
  0x60   :  { %738 = vmatprep.subr.bf16.mxu1 %v965_v0  ;;  %v724_v27 = vpack.c.bf16 %v109_v23, %v108_v22  ;;  %v111_v29 = vld [vmem:[#allocation5 + $0x58] sm:$0xff]  ;;  %v745_v30 = vpack.c.bf16 %v203_v26, %v202_v25  ;;  %v204_v31 = vld [vmem:[#allocation7 + $0x40] sm:$0xff]  ;;  %v205_v32 = vld [vmem:[#allocation7 + $0x48] sm:$0xff] }
  0x61   :  { %716 = vmatpush3.bf16.msra.mxu0 %v715_v7  ;;  %v727_v33 = vpack.c.bf16 %v111_v29, %v110_v28  ;;  %v112_v34 = vld [vmem:[#allocation5 + $0x60] sm:$0xff]  ;;  %v113_v35 = vld [vmem:[#allocation5 + $0x68] sm:$0xff]  ;;  %v748_v36 = vpack.c.bf16 %v205_v32, %v204_v31  ;;  %v206_v37 = vld [vmem:[#allocation7 + $0x50] sm:$0xff]  ;;  %p936_p2 = pnand %p935_p1, %p929_p12 }
  0x62   :  { %717 = vmatprep.subr.bf16.mxu0 %v965_v0  ;;  %v207_v38 = vld [vmem:[#allocation7 + $0x58] sm:$0xff]  ;;  %v730_v39 = vpack.c.bf16 %v113_v35, %v112_v34  ;;  %v114_v40 = vld [vmem:[#allocation5 + $0x70] sm:$0xff]  ;;  %v208_v43 = vld [vmem:[#allocation7 + $0x60] sm:$0xff] }
  0x63   :  { %740 = vmatpush3.bf16.msra.mxu1 %v739_v18  ;;  %v115_v41 = vld [vmem:[#allocation5 + $0x78] sm:$0xff]  ;;  %v751_v42 = vpack.c.bf16 %v207_v38, %v206_v37  ;;  %v209_v44 = vld [vmem:[#allocation7 + $0x68] sm:$0xff]  ;;  %v210_v48 = vld [vmem:[#allocation7 + $0x70] sm:$0xff] }
  0x64   :  { %741 = vmatprep.subr.bf16.mxu1 %v965_v0  ;;  %v733_v45 = vpack.c.bf16 %v115_v41, %v114_v40  ;;  %v754_v46 = vpack.c.bf16 %v209_v44, %v208_v43  ;;  %v99_v47 = vld [vmem:[#allocation2] sm:$0xff]  ;;  %v292_v51 = vld [vmem:[#allocation8] sm:$0xff]  ;;  %v293_v52 = vld [vmem:[#allocation8 + $0x8] sm:$0xff] }
  0x65   :  { %719 = vmatpush3.bf16.msra.mxu0 %v718_v14  ;;  %v211_v49 = vld [vmem:[#allocation7 + $0x78] sm:$0xff]  ;;  %v294_v53 = vld [vmem:[#allocation8 + $0x10] sm:$0xff]  ;;  %v760_v54 = vpack.c.bf16 %v293_v52, %v292_v51  ;;  %v296_v57 = vld [vmem:[#allocation8 + $0x20] sm:$0xff] }
  0x66   :  { %720 = vmatprep.subr.bf16.mxu0 %v965_v0  ;;  %v757_v50 = vpack.c.bf16 %v211_v49, %v210_v48  ;;  %v295_v55 = vld [vmem:[#allocation8 + $0x18] sm:$0xff]  ;;  %v297_v58 = vld [vmem:[#allocation8 + $0x28] sm:$0xff]  ;;  %v298_v60 = vld [vmem:[#allocation8 + $0x30] sm:$0xff] }
  0x67   :  { %743 = vmatpush3.bf16.msra.mxu1 %v742_v24  ;;  %v763_v56 = vpack.c.bf16 %v295_v55, %v294_v53  ;;  %v766_v59 = vpack.c.bf16 %v297_v58, %v296_v57  ;;  %v299_v61 = vld [vmem:[#allocation8 + $0x38] sm:$0xff]  ;;  %v300_v63 = vld [vmem:[#allocation8 + $0x40] sm:$0xff]  ;;  %v301_v2 = vld [vmem:[#allocation8 + $0x48] sm:$0xff] }
  0x68   :  { %744 = vmatprep.subr.bf16.mxu1 %v965_v0  ;;  %v769_v62 = vpack.c.bf16 %v299_v61, %v298_v60  ;;  %v772_v3 = vpack.c.bf16 %v301_v2, %v300_v63  ;;  %v302_v4 = vld [vmem:[#allocation8 + $0x50] sm:$0xff]  ;;  %v303_v5 = vld [vmem:[#allocation8 + $0x58] sm:$0xff]  ;;  %v304_v7 = vld [vmem:[#allocation8 + $0x60] sm:$0xff] }
  0x69   :  { %722 = vmatpush3.bf16.msra.mxu0 %v721_v21  ;;  %v775_v6 = vpack.c.bf16 %v303_v5, %v302_v4  ;;  %v305_v8 = vld [vmem:[#allocation8 + $0x68] sm:$0xff]  ;;  %v499_v10 = vld [vmem:[%s1157_s2] ss:$0 sm:$0xff]  ;;  %v306_v16 = vld [vmem:[#allocation8 + $0x70] sm:$0xff] }
  0x6a   :  { %723 = vmatprep.subr.bf16.mxu0 %v965_v0  ;;  %v778_v9 = vpack.c.bf16 %v305_v8, %v304_v7  ;;  %v307_v17 = vld [vmem:[#allocation8 + $0x78] sm:$0xff]  ;;  %v388_v19 = vld [vmem:[#allocation10] sm:$0xff]  ;;  %v389_v20 = vld [vmem:[#allocation10 + $0x8] sm:$0xff] }
  0x6b   :  { %746 = vmatpush3.bf16.msra.mxu1 %v745_v30  ;;  %v781_v18 = vpack.c.bf16 %v307_v17, %v306_v16  ;;  %v390_v21 = vld [vmem:[#allocation10 + $0x10] sm:$0xff]  ;;  %v784_v22 = vpack.c.bf16 %v389_v20, %v388_v19  ;;  %v391_v23 = vld [vmem:[#allocation10 + $0x18] sm:$0xff]  ;;  %v392_v25 = vld [vmem:[#allocation10 + $0x20] sm:$0xff] }
  0x6c   :  { %747 = vmatprep.subr.bf16.mxu1 %v965_v0  ;;  %v787_v24 = vpack.c.bf16 %v391_v23, %v390_v21  ;;  %v393_v26 = vld [vmem:[#allocation10 + $0x28] sm:$0xff]  ;;  %v395_v28 = vld [vmem:[#allocation10 + $0x38] sm:$0xff]  ;;  %v396_v30 = vld [vmem:[#allocation10 + $0x40] sm:$0xff] }
  0x6d   :  { %725 = vmatpush3.bf16.msra.mxu0 %v724_v27  ;;  %v790_v27 = vpack.c.bf16 %v393_v26, %v392_v25  ;;  %v397_v31 = vld [vmem:[#allocation10 + $0x48] sm:$0xff]  ;;  %v399_v34 = vld [vmem:[#allocation10 + $0x58] sm:$0xff] }
  0x6e   :  { %726 = vmatprep.subr.bf16.mxu0 %v965_v0  ;;  %v796_v32 = vpack.c.bf16 %v397_v31, %v396_v30  ;;  %v401_v37 = vld [vmem:[#allocation10 + $0x68] sm:$0xff]  ;;  %v501_v48 = vld [vmem:[%s1161_s6] ss:$0 sm:$0xff] }
  0x6f   :  { %749 = vmatpush3.bf16.msra.mxu1 %v748_v36  ;;  %v400_v36 = vld [vmem:[#allocation10 + $0x60] sm:$0xff]  ;;  %v502_v53 = vld [vmem:[%s1163_s8] ss:$0 sm:$0xff] }
  0x70   :  { %750 = vmatprep.subr.bf16.mxu1 %v965_v0  ;;  %v802_v38 = vpack.c.bf16 %v401_v37, %v400_v36 }
  0x71   :  { %728 = vmatpush3.bf16.msra.mxu0 %v727_v33  ;;  %v398_v33 = vld [vmem:[#allocation10 + $0x50] sm:$0xff] }
  0x72   :  { %729 = vmatprep.subr.bf16.mxu0 %v965_v0  ;;  %v799_v35 = vpack.c.bf16 %v399_v34, %v398_v33 }
  0x73   :  { %752 = vmatpush3.bf16.msra.mxu1 %v751_v42 }
  0x74   :  { %753 = vmatprep.subr.bf16.mxu1 %v965_v0 }
  0x75   :  { %731 = vmatpush3.bf16.msra.mxu0 %v730_v39  ;;  %v500_v39 = vld [vmem:[%s1159_s4] ss:$0 sm:$0xff] }
  0x76   :  { %732 = vmatprep.subr.bf16.mxu0 %v965_v0 }
  0x77   :  { %755 = vmatpush3.bf16.msra.mxu1 %v754_v46  ;;  %v403_v46 = vld [vmem:[#allocation10 + $0x78] sm:$0xff] }
  0x78   :  { %756 = vmatprep.subr.bf16.mxu1 %v965_v0 }
  0x79   :  { %734 = vmatpush3.bf16.msra.mxu0 %v733_v45  ;;  %v402_v45 = vld [vmem:[#allocation10 + $0x70] sm:$0xff] }
  0x7a   :  { %759 = vmatprep.subr.bf16.mxu0 %v965_v0 }
  0x7b   :  { %758 = vmatpush3.bf16.msra.mxu1 %v757_v50 }
  0x7c   :  { %604 = vmatmul.mubr.f32.vlgmr.msra.gmra.mrb[0].mxu0 %v99_v47  ;;  %783 = vmatprep.subr.bf16.mxu1 %v965_v0  ;;  %v805_v47 = vpack.c.bf16 %v403_v46, %v402_v45 }
  0x7d   :  { %673 = vmatprep.mubr.msk.f32.mxu0 %vm966_vm0, %v967_v1  ;;  %761 = vmatpush3.bf16.msra.mxu0 %v760_v54 }
  0x7e   :  { %762 = vmatprep.subr.bf16.mxu0 %v965_v0 }
  0x81   :  { %764 = vmatpush3.bf16.msra.mxu0 %v763_v56 }
  0x82   :  { %765 = vmatprep.subr.bf16.mxu0 %v965_v0 }
  0x85   :  { %767 = vmatpush3.bf16.msra.mxu0 %v766_v59 }
  0x86   :  { %768 = vmatprep.subr.bf16.mxu0 %v965_v0 }
  0x89   :  { %770 = vmatpush3.bf16.msra.mxu0 %v769_v62 }
  0x8a   :  { %771 = vmatprep.subr.bf16.mxu0 %v965_v0 }
  0x8d   :  { %773 = vmatpush3.bf16.msra.mxu0 %v772_v3 }
  0x8e   :  { %774 = vmatprep.subr.bf16.mxu0 %v965_v0 }
  0x91   :  { %776 = vmatpush3.bf16.msra.mxu0 %v775_v6 }
  0x92   :  { %777 = vmatprep.subr.bf16.mxu0 %v965_v0 }
  0x95   :  { %779 = vmatpush3.bf16.msra.mxu0 %v778_v9 }
  0x96   :  { %780 = vmatprep.subr.bf16.mxu0 %v965_v0 }
  0x99   :  { %782 = vmatpush3.bf16.msra.mxu0 %v781_v18 }
 0x14f   :  { %v189_v11 = vpop.f32.mrb[0].mxu0 }
 0x150   :  { %v190_v12 = vadd.f32 %v499_v10, %v189_v11  ;;  %v605_v13 = vpop.f32.mrb[1].mxu0 }
 0x152   :  { %v194_v14 = vmul.f32 0.2, %v190_v12  ;;  %vm193_vm1 = vcmp.ge.f32.partialorder %v190_v12, 0.0 }
 0x154   :  { %v195_v15 = vsel %vm193_vm1, %v190_v12, %v194_v14 }
 0x155   :  { %639 = vmatmul.mubr.f32.vlgmr.msra.gmra.mrb[0].mxu1 %v195_v15 }
 0x156   :  { %708 = vmatprep.mubr.msk.f32.mxu1 %vm966_vm0, %v967_v1  ;;  %785 = vmatpush3.bf16.msra.mxu1 %v784_v22  ;;  %v394_v1 = vld [vmem:[#allocation10 + $0x30] sm:$0xff] }
 0x157   :  { %786 = vmatprep.subr.bf16.mxu1 %v965_v0  ;;  %v793_v29 = vpack.c.bf16 %v395_v28, %v394_v1 }
 0x15a   :  { %788 = vmatpush3.bf16.msra.mxu1 %v787_v24 }
 0x15b   :  { %789 = vmatprep.subr.bf16.mxu1 %v965_v0 }
 0x15e   :  { %791 = vmatpush3.bf16.msra.mxu1 %v790_v27 }
 0x15f   :  { %792 = vmatprep.subr.bf16.mxu1 %v965_v0 }
 0x162   :  { %794 = vmatpush3.bf16.msra.mxu1 %v793_v29 }
 0x163   :  { %795 = vmatprep.subr.bf16.mxu1 %v965_v0 }
 0x166   :  { %797 = vmatpush3.bf16.msra.mxu1 %v796_v32 }
 0x167   :  { %798 = vmatprep.subr.bf16.mxu1 %v965_v0 }
 0x16a   :  { %800 = vmatpush3.bf16.msra.mxu1 %v799_v35 }
 0x16b   :  { %801 = vmatprep.subr.bf16.mxu1 %v965_v0 }
 0x16e   :  { %803 = vmatpush3.bf16.msra.mxu1 %v802_v38 }
 0x16f   :  { %804 = vmatprep.subr.bf16.mxu1 %v965_v0 }
 0x172   :  { %806 = vmatpush3.bf16.msra.mxu1 %v805_v47 }
 0x228   :  { %v285_v40 = vpop.f32.mrb[0].mxu1 }
 0x229   :  { %v286_v41 = vadd.f32 %v500_v39, %v285_v40  ;;  %v640_v42 = vpop.f32.mrb[1].mxu1 }
 0x22b   :  { %vm289_vm2 = vcmp.ge.f32.partialorder %v286_v41, 0.0  ;;  %v290_v43 = vmul.f32 0.2, %v286_v41 }
 0x22d   :  { %v291_v44 = vsel %vm289_vm2, %v286_v41, %v290_v43 }
 0x22e   :  { %674 = vmatmul.mubr.f32.vlgmr.msra.gmra.mrb[2].mxu0 %v291_v44 }
 0x301   :  { %v381_v0 = vpop.f32.mrb[2].mxu0 }
 0x302   :  { %v382_v49 = vadd.f32 %v501_v48, %v381_v0  ;;  %v675_v50 = vpop.f32.mrb[3].mxu0 }
 0x304   :  { %vm385_vm3 = vcmp.ge.f32.partialorder %v382_v49, 0.0  ;;  %v386_v51 = vmul.f32 0.2, %v382_v49 }
 0x306   :  { %v387_v52 = vsel %vm385_vm3, %v382_v49, %v386_v51 }
 0x307   :  { %709 = vmatmul.mubr.f32.vlgmr.msra.gmra.mrb[2].mxu1 %v387_v52 }
 0x3da   :  { %v477_v54 = vpop.f32.mrb[2].mxu1 }
 0x3db   :  { %v478_v55 = vadd.f32 %v502_v53, %v477_v54  ;;  %v710_v56 = vpop.f32.mrb[3].mxu1 }
 0x3dd   :  { %481 = vst [vmem:[#allocation11] sm:$0xff] %v478_v55 }
 0x3de   :  { %939 = shalt.err (!%p936_p2)
}
 0x3df   :  { %s940_s10 = scalar_lea.hbm %s1164_s9, 128 }
 0x3e0   :  { %p941_p3 = scmp.ne.s32.totalorder %s1164_s9, %s940_s10  ;;  %p944_p4 = scmp.lt.u32.totalorder %s940_s10, %s1164_s9 }
 0x3e2   :  { %p946_p5 = pnand %p944_p4, %p941_p3 }
 0x3e4   :  { %949 = shalt.err (!%p946_p5)
}
 0x3e5   :  { %491 = dma.vmem_to_hbm [thread:$0]  %s489_s12, 128, %s1164_s9, [#allocation4]  }
 0x3e6   :  { %956 = dma.done.wait [#allocation4], 128  }
 0x3e7   :  { %957 = vsyncadd [#allocation4], 4294967168 }
 0x3e8   :  { %495 = vsyncpa [#allocation3], 1 }
 0x3e9   :  { %496 = vsyncpa [#allocation6], 1 }
 0x3ea   :  { %497 = vsyncpa [#allocation9], 1 }
 0x3eb   :  { %498 = vsyncpa [#allocation4], 1 }

</bundles_post_ra>
